<compile_context>
chip_gen: v5e
topology: v5e:2x2
jax: 0.10.0
libtpu: 0.0.40
codegen_flags: <defaults>
</compile_context>

<pallas_src>
import jax
import jax.numpy as jnp
from jax.experimental import pallas as pl
from jax.experimental.pallas import tpu as pltpu
import numpy as np


def _param_classifier_fused_kernel(x_ref, w1_ref, b1_ref, w2_ref, b2_ref, logits_ref):
    # x: (TM, D) bf16; w1: (D, P*H) bf16; b1: (1, P*H) f32;
    # w2: (P*H, P*K) bf16 block-diagonal; b2: (1, P*K) f32; logits: (TM, P*K) embed dtype.
    x = x_ref[...]
    h = jnp.dot(x, w1_ref[...], preferred_element_type=jnp.float32) + b1_ref[...]
    h = jnp.maximum(h, 0.0)                        # ReLU for all heads at once (f32)
    h = h.astype(w2_ref.dtype)                     # bf16 operand for single-pass MXU
    logits = jnp.dot(h, w2_ref[...], preferred_element_type=jnp.float32) + b2_ref[...]
    logits_ref[...] = logits.astype(logits_ref.dtype)   # lane-dense (TM, P*K) store


def parameter_classifier_forward(embed, w1s, b1s, w2bd, b2s, param_vals, *, block_m=512):
    """embed: (B, D); w1s: (D, P*H) bf16; b1s: (1, P*H) f32; w2bd: (P*H, P*K) bf16;
    b2s: (1, P*K) f32; param_vals: (K,) f32 (the module's linspace(0, 1, num_bins) buffer)."""
    B, D = embed.shape
    PH = w1s.shape[1]
    PK = w2bd.shape[1]
    K = param_vals.shape[0]
    P = PK // K

    compute_dtype = w1s.dtype
    x = embed.astype(compute_dtype)                # bf16 embed stream (halves input DMA)

    tm = min(block_m, B)                           # (tm, D) is legal: tm%8==0 or tm==B
    grid = (pl.cdiv(B, tm),)

    out_itemsize = jnp.dtype(embed.dtype).itemsize
    bytes_accessed = int(
        x.size * jnp.dtype(x.dtype).itemsize
        + w1s.size * jnp.dtype(w1s.dtype).itemsize
        + b1s.size * jnp.dtype(b1s.dtype).itemsize
        + w2bd.size * jnp.dtype(w2bd.dtype).itemsize
        + b2s.size * jnp.dtype(b2s.dtype).itemsize
        + B * PK * out_itemsize)
    cost = pl.CostEstimate(
        flops=int(2 * B * (D * PH + PH * PK)),
        transcendentals=0,
        bytes_accessed=bytes_accessed)

    logits_flat = pl.pallas_call(
        _param_classifier_fused_kernel,
        out_shape=jax.ShapeDtypeStruct((B, PK), embed.dtype),
        grid_spec=pltpu.PrefetchScalarGridSpec(
            num_scalar_prefetch=0,
            grid=grid,
            in_specs=[
                pl.BlockSpec((tm, D), lambda i: (i, 0)),     # embed tile: streamed
                pl.BlockSpec((D, PH), lambda i: (0, 0)),     # W1: VMEM-resident
                pl.BlockSpec((1, PH), lambda i: (0, 0)),     # b1: VMEM-resident
                pl.BlockSpec((PH, PK), lambda i: (0, 0)),    # W2 block-diag: VMEM-resident
                pl.BlockSpec((1, PK), lambda i: (0, 0)),     # b2: VMEM-resident
            ],
            out_specs=pl.BlockSpec((tm, PK), lambda i: (i, 0)),
        ),
        compiler_params=pltpu.CompilerParams(
            dimension_semantics=("parallel",)),              # shard batch over v7x's 2 TCs
        cost_estimate=cost,
    )(x, w1s, b1s, w2bd, b2s)

    params_logits = logits_flat.reshape(B, P, K)   # free row-major reshape -> (B, P, K)
    bin_idx = jnp.argmax(params_logits, axis=-1)   # first-max, like torch.argmax (same jit)
    params = jnp.take(param_vals, bin_idx).astype(jnp.float32)
    return params, params_logits


def init_params(key, num_params, input_dim, hidden_dim, num_bins):
    """Per-head weights mirroring torch.nn.Linear's uniform(-1/sqrt(fan_in), 1/sqrt(fan_in)),
    stored stacked and pre-transposed (in_features, out_features)."""
    k1, k2, k3, k4 = jax.random.split(key, 4)
    lim1 = 1.0 / np.sqrt(input_dim)
    lim2 = 1.0 / np.sqrt(hidden_dim)
    w1 = jax.random.uniform(k1, (num_params, input_dim, hidden_dim), jnp.float32, -lim1, lim1)
    b1 = jax.random.uniform(k2, (num_params, hidden_dim), jnp.float32, -lim1, lim1)
    w2 = jax.random.uniform(k3, (num_params, hidden_dim, num_bins), jnp.float32, -lim2, lim2)
    b2 = jax.random.uniform(k4, (num_params, num_bins), jnp.float32, -lim2, lim2)
    return w1, b1, w2, b2


def pack_weights(w1, b1, w2, b2, compute_dtype=jnp.bfloat16):
    """One-time packing into fused, lane-dense forms (weights in bf16, biases in f32).
    w1: (P, D, H) -> (D, P*H); w2: (P, H, K) -> block-diagonal (P*H, P*K)."""
    P, D, H = w1.shape
    K = w2.shape[-1]
    w1s = jnp.transpose(w1, (1, 0, 2)).reshape(D, P * H).astype(compute_dtype)
    b1s = b1.reshape(1, P * H).astype(jnp.float32)
    eye = jnp.eye(P, dtype=w2.dtype)
    w2bd = jnp.einsum("phk,pq->phqk", w2, eye).reshape(P * H, P * K).astype(compute_dtype)
    b2s = b2.reshape(1, P * K).astype(jnp.float32)
    # NOTE: block-diagonal packing grows as P^2*H*K; for many heads, use a per-head grid axis.
    return w1s, b1s, w2bd, b2s


if __name__ == "__main__":
    # Small, module-consistent shapes.
    B, input_dim, hidden_dim, num_params, num_bins = 2, 32, 32, 4, 64

    key = jax.random.PRNGKey(0)
    k_embed, k_init = jax.random.split(key)
    embed = jax.random.normal(k_embed, (B, input_dim), jnp.float32)
    w1, b1, w2, b2 = init_params(k_init, num_params, input_dim, hidden_dim, num_bins)
    w1s, b1s, w2bd, b2s = pack_weights(w1, b1, w2, b2)                 # one-time cost
    param_vals = jnp.linspace(0.0, 1.0, num_bins, dtype=jnp.float32)   # module buffer

    fwd = jax.jit(parameter_classifier_forward)
    params, params_logits = fwd(embed, w1s, b1s, w2bd, b2s, param_vals)
    params = jax.block_until_ready(params)
    params_logits = jax.block_until_ready(params_logits)

    # Reference A: pure-JAX per-head path using the SAME bf16-operand / f32-accumulate math
    # as the kernel (tight tolerance + argmax comparison).
    x_bf = embed.astype(jnp.bfloat16)
    w1_bf = w1.astype(jnp.bfloat16)
    w2_bf = w2.astype(jnp.bfloat16)
    h_a = jnp.einsum("bd,pdh->pbh", x_bf, w1_bf,
                     preferred_element_type=jnp.float32) + b1[:, None, :]
    h_a = jnp.maximum(h_a, 0.0).astype(jnp.bfloat16)
    logits_a = jnp.einsum("pbh,phk->pbk", h_a, w2_bf,
                          preferred_element_type=jnp.float32) + b2[:, None, :]
    logits_a = jnp.transpose(logits_a, (1, 0, 2)).astype(embed.dtype)   # (B, P, K)
    params_a = jnp.take(param_vals, jnp.argmax(logits_a, axis=-1)).astype(jnp.float32)

    np.testing.assert_allclose(np.asarray(params_logits), np.asarray(logits_a),
                               rtol=1e-4, atol=1e-4)
    np.testing.assert_allclose(np.asarray(params), np.asarray(params_a),
                               rtol=0, atol=1e-6)   # same bin selected

    # Reference B: full-f32 per-head path (mirrors the PyTorch module exactly); loose
    # bf16-style tolerance per the review since the kernel uses bf16 operands.
    h_b = jnp.maximum(jnp.einsum("bd,pdh->pbh", embed, w1) + b1[:, None, :], 0.0)
    logits_b = jnp.einsum("pbh,phk->pbk", h_b, w2) + b2[:, None, :]
    logits_b = jnp.transpose(logits_b, (1, 0, 2))
    np.testing.assert_allclose(np.asarray(params_logits), np.asarray(logits_b),
                               rtol=3e-2, atol=3e-2)

    assert params.shape == (B, num_params) and params.dtype == jnp.float32
    assert params_logits.shape == (B, num_params, num_bins)
    assert params_logits.dtype == embed.dtype
    print("KERNEL_OK")
</pallas_src>

<mosaic_0001>
module attributes {stable_mosaic.version = 11 : i64} {
  func.func @_param_classifier_fused_kernel(%arg0: i32, %arg1: memref<2x32xbf16, #tpu.memory_space<vmem>>, %arg2: memref<32x128xbf16, #tpu.memory_space<vmem>>, %arg3: memref<1x128xf32, #tpu.memory_space<vmem>>, %arg4: memref<128x256xbf16, #tpu.memory_space<vmem>>, %arg5: memref<1x256xf32, #tpu.memory_space<vmem>>, %arg6: memref<2x256xf32, #tpu.memory_space<vmem>>) attributes {dimension_semantics = [#tpu.dimension_semantics<parallel>], iteration_bounds = array<i64: 1>, scalar_prefetch = 0 : i64, scratch_operands = 0 : i64, tpu.core_type = #tpu.core_type<tc>, window_params = [{transform_indices = @transform_0, window_bounds = array<i64: 2, 32>}, {pipeline_mode = #tpu.pipeline_mode<synchronous>, transform_indices = @transform_1, window_bounds = array<i64: 32, 128>}, {pipeline_mode = #tpu.pipeline_mode<synchronous>, transform_indices = @transform_2, window_bounds = array<i64: 1, 128>}, {pipeline_mode = #tpu.pipeline_mode<synchronous>, transform_indices = @transform_3, window_bounds = array<i64: 128, 256>}, {pipeline_mode = #tpu.pipeline_mode<synchronous>, transform_indices = @transform_4, window_bounds = array<i64: 1, 256>}, {transform_indices = @transform_5, window_bounds = array<i64: 2, 256>}]} {
    %c0 = arith.constant 0 : index
    %c0_0 = arith.constant 0 : index
    %0 = vector.load %arg1[%c0, %c0_0] : memref<2x32xbf16, #tpu.memory_space<vmem>>, vector<2x32xbf16>
    %c0_1 = arith.constant 0 : index
    %c0_2 = arith.constant 0 : index
    %1 = vector.load %arg2[%c0_1, %c0_2] : memref<32x128xbf16, #tpu.memory_space<vmem>>, vector<32x128xbf16>
    %cst = arith.constant dense<0.000000e+00> : vector<2x128xf32>
    %2 = tpu.matmul %0, %1, %cst {dimension_numbers = #tpu.dot_dimension_numbers<[1], [0], [0], [1], [0, 0, 1, 1], [], []>} : vector<2x32xbf16>, vector<32x128xbf16>, vector<2x128xf32> -> vector<2x128xf32>
    %c0_3 = arith.constant 0 : index
    %c0_4 = arith.constant 0 : index
    %3 = vector.load %arg3[%c0_3, %c0_4] : memref<1x128xf32, #tpu.memory_space<vmem>>, vector<1x128xf32>
    %4 = vector.broadcast %3 : vector<1x128xf32> to vector<2x128xf32>
    %5 = arith.addf %2, %4 : vector<2x128xf32>
    %cst_5 = arith.constant 0.000000e+00 : f32
    %6 = vector.broadcast %cst_5 : f32 to vector<2x128xf32>
    %7 = arith.maximumf %5, %6 : vector<2x128xf32>
    %8 = arith.truncf %7 : vector<2x128xf32> to vector<2x128xbf16>
    %c0_6 = arith.constant 0 : index
    %c0_7 = arith.constant 0 : index
    %9 = vector.load %arg4[%c0_6, %c0_7] : memref<128x256xbf16, #tpu.memory_space<vmem>>, vector<128x256xbf16>
    %cst_8 = arith.constant dense<0.000000e+00> : vector<2x256xf32>
    %10 = tpu.matmul %8, %9, %cst_8 {dimension_numbers = #tpu.dot_dimension_numbers<[1], [0], [0], [1], [0, 0, 1, 1], [], []>} : vector<2x128xbf16>, vector<128x256xbf16>, vector<2x256xf32> -> vector<2x256xf32>
    %c0_9 = arith.constant 0 : index
    %c0_10 = arith.constant 0 : index
    %11 = vector.load %arg5[%c0_9, %c0_10] : memref<1x256xf32, #tpu.memory_space<vmem>>, vector<1x256xf32>
    %12 = vector.broadcast %11 : vector<1x256xf32> to vector<2x256xf32>
    %13 = arith.addf %10, %12 : vector<2x256xf32>
    %c0_11 = arith.constant 0 : index
    %c0_12 = arith.constant 0 : index
    %14 = vector.load %arg6[%c0_11, %c0_12] : memref<2x256xf32, #tpu.memory_space<vmem>>, vector<2x256xf32>
    tpu.vector_store %arg6[%c0_11, %c0_12], %13 {strides = array<i32>} : memref<2x256xf32, #tpu.memory_space<vmem>>, vector<2x256xf32>,
    return
  }
  func.func @transform_0(%arg0: i32) -> (i32, i32) {
    %c0_i32 = arith.constant 0 : i32
    %c0_i32_0 = arith.constant 0 : i32
    return %arg0, %c0_i32 : i32, i32
  }
  func.func @transform_1(%arg0: i32) -> (i32, i32) {
    %c0_i32 = arith.constant 0 : i32
    %c0_i32_0 = arith.constant 0 : i32
    %c0_i32_1 = arith.constant 0 : i32
    return %c0_i32, %c0_i32_0 : i32, i32
  }
  func.func @transform_2(%arg0: i32) -> (i32, i32) {
    %c0_i32 = arith.constant 0 : i32
    %c0_i32_0 = arith.constant 0 : i32
    %c0_i32_1 = arith.constant 0 : i32
    return %c0_i32, %c0_i32_0 : i32, i32
  }
  func.func @transform_3(%arg0: i32) -> (i32, i32) {
    %c0_i32 = arith.constant 0 : i32
    %c0_i32_0 = arith.constant 0 : i32
    %c0_i32_1 = arith.constant 0 : i32
    return %c0_i32, %c0_i32_0 : i32, i32
  }
  func.func @transform_4(%arg0: i32) -> (i32, i32) {
    %c0_i32 = arith.constant 0 : i32
    %c0_i32_0 = arith.constant 0 : i32
    %c0_i32_1 = arith.constant 0 : i32
    return %c0_i32, %c0_i32_0 : i32, i32
  }
  func.func @transform_5(%arg0: i32) -> (i32, i32) {
    %c0_i32 = arith.constant 0 : i32
    %c0_i32_0 = arith.constant 0 : i32
    return %arg0, %c0_i32 : i32, i32
  }
}

</mosaic_0001>

<bundles_post_ra>
// kernel: parameter_classifier_forward.1
= control target key start
LH: loop header
LB: loop body
LE: loop exit
PB: predicated region body
PF: predicated region fallthrough
CT: control target
= control target key end

     0   :  { %10 = vsyncpa [#allocation3], 0  ;;  %s438_s0 = inlined_call_operand.vmem [shape: bf16[2,32], index: 0, kind: input, shape index: {}]   ;;  %s439_s1 = inlined_call_operand.hbm [shape: bf16[32,128], index: 1, kind: input, shape index: {}]   ;;  %s440_s2 = inlined_call_operand.vmem [shape: f32[1,128], index: 2, kind: input, shape index: {}]   ;;  %s441_s3 = inlined_call_operand.hbm [shape: bf16[128,256], index: 3, kind: input, shape index: {}]   ;;  %s442_s4 = inlined_call_operand.vmem [shape: f32[1,256], index: 4, kind: input, shape index: {}]   ;;  %s443_s5 = inlined_call_operand.vmem [shape: f32[2,256], index: 5, kind: output, shape index: {}]  }
   0x1   :  { %s18_s20 = sshll.u32 %s439_s1, 4  ;;  %s19_s20 = int_to_ptr.hbm [resolvable:$true] %s18_s20 }
   0x2   :  { %11 = vsyncpa [#allocation5], 0  ;;  %s384_s21 = smov [#allocation2]   ;;  %s33_s25 = sshll.u32 %s441_s3, 4  ;;  %s34_s25 = int_to_ptr.hbm [resolvable:$true] %s33_s25 }
   0x3   :  { %s20_s22 = sshll.u32 %s384_s21, 4  ;;  %s385_s26 = smov 64   ;;  %s21_s22 = int_to_ptr.vmem [resolvable:$true] %s20_s22 }
   0x4   :  { %s386_s27 = smov 4   ;;  %s387_s28 = smov [#allocation4]  }
   0x5   :  { %26 = dma.hbm_to_vmem [thread:$0]  %s19_s20, 256, %s21_s22, [#allocation3], %s385_s26, %s385_s26, %s386_s27  }
   0x6   :  { %s35_s29 = sshll.u32 %s387_s28, 4  ;;  %s388_s30 = smov 128   ;;  %s36_s29 = int_to_ptr.vmem [resolvable:$true] %s35_s29 }
   0x7   :  { %s389_s6 = smov 8  }
   0x8   :  { %41 = dma.hbm_to_vmem [thread:$0]  %s34_s25, 2048, %s36_s29, [#allocation5], %s388_s30, %s388_s30, %s389_s6  }
   0x9   :  { %380 = dma.done.wait [#allocation3], 256  }
   0xa   :  { %381 = vsyncadd [#allocation3], 4294967040 }
   0xb   :  { %382 = dma.done.wait [#allocation5], 2048  }
   0xc   :  { %383 = vsyncadd [#allocation5], 4294965248  ;;  %v308_v0 = vld [vmem:[#allocation2 + $0x8] sm:$0xff]  ;;  %v307_v1 = vld [vmem:[#allocation2] sm:$0xff]  ;;  %vm74_vm0 = vcmask 261120   ;;  %vm224_vm1 = vcmask 1041408  }
   0xd   :  { %v301_v2 = vld [vmem:[#allocation4 + $0x70] sm:$0xf]  ;;  %v324_v3 = vld [vmem:[#allocation4 + $0x74] sm:$0xf0]  ;;  %v323_v4 = vld [vmem:[#allocation4 + $0x74] sm:$0xf]  ;;  %84 = vmatpush.bf16.msra.mxu0 %v308_v0 }
   0xe   :  { %v302_v5 = vor.u32 %v324_v3, %v301_v2  ;;  %v303_v6 = vld [vmem:[#allocation4 + $0x78] sm:$0xf0]  ;;  %v293_v7 = vld [vmem:[#allocation4 + $0x60] sm:$0xf]  ;;  %v322_v8 = vld [vmem:[#allocation4 + $0x64] sm:$0xf0] }
   0xf   :  { %v306_v9 = vor.u32 %v323_v4, %v303_v6  ;;  %v321_v10 = vld [vmem:[#allocation4 + $0x64] sm:$0xf]  ;;  %v295_v11 = vld [vmem:[#allocation4 + $0x68] sm:$0xf0]  ;;  %v294_v12 = vor.u32 %v322_v8, %v293_v7  ;;  %v285_v14 = vld [vmem:[#allocation4 + $0x50] sm:$0xf] }
  0x10   :  { %195 = vmatpush.bf16.msra.mxu1 %v302_v5  ;;  %v298_v13 = vor.u32 %v321_v10, %v295_v11  ;;  %v320_v15 = vld [vmem:[#allocation4 + $0x54] sm:$0xf0]  ;;  %v53_v16 = vld [vmem:[%s438_s0] sm:$0x1]  ;;  %v319_v17 = vld [vmem:[#allocation4 + $0x54] sm:$0xf] }
  0x11   :  { %208 = vmatpush.bf16.msra.mxu2 %v306_v9  ;;  %85 = vmatpush.bf16.msra.mxu0 %v307_v1  ;;  %v287_v18 = vld [vmem:[#allocation4 + $0x58] sm:$0xf0]  ;;  %v286_v19 = vor.u32 %v320_v15, %v285_v14  ;;  %v277_v21 = vld [vmem:[#allocation4 + $0x40] sm:$0xf]  ;;  %v318_v22 = vld [vmem:[#allocation4 + $0x44] sm:$0xf0] }
  0x12   :  { %v290_v20 = vor.u32 %v319_v17, %v287_v18  ;;  %v317_v23 = vld [vmem:[#allocation4 + $0x44] sm:$0xf]  ;;  %v279_v24 = vld [vmem:[#allocation4 + $0x48] sm:$0xf0]  ;;  %v278_v25 = vor.u32 %v318_v22, %v277_v21  ;;  %v269_v27 = vld [vmem:[#allocation4 + $0x30] sm:$0xf] }
  0x13   :  { %v282_v26 = vor.u32 %v317_v23, %v279_v24  ;;  %v316_v28 = vld [vmem:[#allocation4 + $0x34] sm:$0xf0]  ;;  %v315_v29 = vld [vmem:[#allocation4 + $0x34] sm:$0xf]  ;;  %v271_v30 = vld [vmem:[#allocation4 + $0x38] sm:$0xf0] }
  0x14   :  { %196 = vmatpush.bf16.msra.mxu1 %v294_v12  ;;  %242 = vmatmul.msk.bf16.vlgmr.msra.gmra.mxu0 %vm74_vm0, %v53_v16  ;;  %v270_v31 = vor.u32 %v316_v28, %v269_v27  ;;  %v274_v32 = vor.u32 %v315_v29, %v271_v30  ;;  %v261_v33 = vld [vmem:[#allocation4 + $0x20] sm:$0xf]  ;;  %v314_v34 = vld [vmem:[#allocation4 + $0x24] sm:$0xf0]  ;;  %v313_v35 = vld [vmem:[#allocation4 + $0x24] sm:$0xf] }
  0x15   :  { %209 = vmatpush.bf16.msra.mxu2 %v298_v13  ;;  %v263_v36 = vld [vmem:[#allocation4 + $0x28] sm:$0xf0]  ;;  %v262_v37 = vor.u32 %v314_v34, %v261_v33  ;;  %v253_v39 = vld [vmem:[#allocation4 + $0x10] sm:$0xf]  ;;  %v312_v40 = vld [vmem:[#allocation4 + $0x14] sm:$0xf0] }
  0x16   :  { %v266_v38 = vor.u32 %v313_v35, %v263_v36  ;;  %v311_v41 = vld [vmem:[#allocation4 + $0x14] sm:$0xf]  ;;  %v254_v42 = vor.u32 %v312_v40, %v253_v39  ;;  %v255_v43 = vld [vmem:[#allocation4 + $0x18] sm:$0xf0]  ;;  %v245_v45 = vld [vmem:[#allocation4] sm:$0xf] }
  0x17   :  { %v258_v44 = vor.u32 %v311_v41, %v255_v43  ;;  %v310_v46 = vld [vmem:[#allocation4 + $0x4] sm:$0xf0]  ;;  %v309_v47 = vld [vmem:[#allocation4 + $0x4] sm:$0xf]  ;;  %v247_v49 = vld [vmem:[#allocation4 + $0x8] sm:$0xf0] }
  0x18   :  { %197 = vmatpush.bf16.msra.mxu1 %v286_v19  ;;  %v246_v48 = vor.u32 %v310_v46, %v245_v45  ;;  %v250_v50 = vor.u32 %v309_v47, %v247_v49  ;;  %v331_v51 = vld [vmem:[%s440_s2] ss:$0 sm:$0xff] }
  0x19   :  { %210 = vmatpush.bf16.msra.mxu2 %v290_v20  ;;  %v109_v58 = vld [vmem:[%s442_s4] sm:$0x3] }
  0x1a   :  { %v112_v59 = vperm.slane %v109_v58, 1  ;;  %v111_v60 = vperm.slane %v109_v58, 0 }
  0x1c   :  { %198 = vmatpush.bf16.msra.mxu1 %v278_v25 }
  0x1d   :  { %211 = vmatpush.bf16.msra.mxu2 %v282_v26 }
  0x20   :  { %199 = vmatpush.bf16.msra.mxu1 %v270_v31 }
  0x21   :  { %212 = vmatpush.bf16.msra.mxu2 %v274_v32 }
  0x24   :  { %200 = vmatpush.bf16.msra.mxu1 %v262_v37 }
  0x25   :  { %213 = vmatpush.bf16.msra.mxu2 %v266_v38 }
  0x28   :  { %201 = vmatpush.bf16.msra.mxu1 %v254_v42 }
  0x29   :  { %214 = vmatpush.bf16.msra.mxu2 %v258_v44 }
  0x2c   :  { %202 = vmatpush.bf16.msra.mxu1 %v246_v48 }
  0x2d   :  { %215 = vmatpush.bf16.msra.mxu2 %v250_v50 }
  0x91   :  { %v87_v52 = vpop.f32.mrf.mxu0 }
  0x92   :  { %v88_v53 = vadd.f32 %v331_v51, %v87_v52 }
  0x94   :  { %v91_v54 = vmax.f32 %v88_v53, 0.0 }
  0x96   :  { %v92_v55 = vpack.c.bf16 %v91_v54, %v91_v54 }
  0x98   :  { %203 = vmatmul.bf16.vlgmr.msra.gmra.mxu1 %v92_v55  ;;  %216 = vmatmul.bf16.vlgmr.msra.gmra.mxu2 %v92_v55 }
  0x99   :  { %v89_v56 = vpop.f32.mrf.mxu0 }
 0x115   :  { %v204_v57 = vpop.f32.mrf.mxu1 }
 0x116   :  { %v205_v0 = vadd.f32 %v204_v57, %v111_v60 }
 0x11b   :  { %v217_v61 = vpop.f32.mrf.mxu2 }
 0x11c   :  { %v218_v62 = vadd.f32 %v217_v61, %v112_v59 }
 0x11d   :  { %v206_v63 = vpop.f32.mrf.mxu1 }
 0x11e   :  { %v223_v1 = vrot.slane %v218_v62, 6 }
 0x120   :  { %v225_v2 = vsel %vm224_vm1, %v205_v0, %v223_v1 }
 0x121   :  { %227 = vst [vmem:[%s443_s5] sm:$0xf] %v225_v2 }
 0x123   :  { %v219_v3 = vpop.f32.mrf.mxu2 }
 0x124   :  { %232 = vsyncpa [#allocation3], 1 }
 0x125   :  { %233 = vsyncpa [#allocation5], 1 }

</bundles_post_ra>
